<compile_context>
chip_gen: v6e
topology: v6e:2x2x1
jax: 0.10.0
libtpu: 0.0.40
codegen_flags: <defaults>
</compile_context>

<pallas_src>
import jax
import jax.numpy as jnp
from jax.experimental import pallas as pl
from jax.experimental.pallas import tpu as pltpu


def _mlp_kernel(x_ref, w1_ref, b1_ref, w2_ref, b2_ref, w3_ref, o_ref):
    """One batch (lane) tile of the fused 3-layer MLP, entirely in VMEM.

    x_ref : (d_in, Bt)   activations, batch on lanes
    w*    : (out, in)    PyTorch layout, grid-invariant
    b*    : (H, 1)       f32, broadcasts across the lane (batch) axis
    o_ref : (d_out, Bt)
    """
    x = x_ref[...]

    # Layer 1: (H, d_in) @ (d_in, Bt) -> (H, Bt), f32 accumulation on the MXU.
    h = jnp.dot(w1_ref[...], x, preferred_element_type=jnp.float32)
    h = jnp.tanh(h + b1_ref[...])                       # f32 bias/tanh (v5e-safe)

    # Layer 2: cast activations back to the matmul operand dtype (bf16 on
    # v6e/v7x when requested); accumulation stays f32.
    h = jnp.dot(w2_ref[...], h.astype(w2_ref.dtype),
                preferred_element_type=jnp.float32)
    h = jnp.tanh(h + b2_ref[...])

    # Layer 3 (no bias): lane-dense store of (d_out, Bt).
    o = jnp.dot(w3_ref[...], h.astype(w3_ref.dtype),
                preferred_element_type=jnp.float32)
    o_ref[...] = o.astype(o_ref.dtype)


def _pick_batch_tile(B):
    """Lane-axis (batch) tile.

    Multiple of 128 that divides B, preferring 512-2048-wide tiles, and at
    least 2 grid steps when possible (v7x has 2 TensorCores per chip).
    Falls back to a single monolithic block (grid=(1,)) for small/odd B,
    where the grid machinery would be pure overhead.
    """
    if B % 128 != 0:
        return B
    for t in (2048, 1024, 512, 256, 128):
        if B % t == 0 and B // t >= 2:
            return t
    return B


def mlp_forward_lane_major(x_t, w1, b1, w2, b2, w3, *, batch_tile=None,
                           compute_dtype=None):
    """Core kernel call on the lane-major (transposed) layout.

    x_t : (d_in, B)      activations with batch on the last (lane) axis
    w1  : (H, d_in)      b1 : (H,) or (H, 1)
    w2  : (H, H)         b2 : (H,) or (H, 1)
    w3  : (d_out, H)     (no bias)
    Returns (d_out, B).
    """
    d_in, B = x_t.shape
    H = w1.shape[0]
    d_out = w3.shape[0]
    assert w1.shape == (H, d_in), w1.shape
    assert w2.shape == (H, H), w2.shape
    assert w3.shape == (d_out, H), w3.shape

    out_dtype = x_t.dtype
    # Biases stay f32 (2-D (H,1) so they broadcast across batch lanes).
    b1 = jnp.asarray(b1, jnp.float32).reshape(H, 1)
    b2 = jnp.asarray(b2, jnp.float32).reshape(H, 1)

    # Optional bf16 matmul-operand path (v6e/v7x MXU); accumulation stays f32.
    if compute_dtype is not None:
        x_t = x_t.astype(compute_dtype)
        w1 = w1.astype(compute_dtype)
        w2 = w2.astype(compute_dtype)
        w3 = w3.astype(compute_dtype)

    if batch_tile is None:
        batch_tile = _pick_batch_tile(B)
    if batch_tile != B:
        assert B % batch_tile == 0, "batch_tile must divide B"
        assert batch_tile % 128 == 0, (
            "partial batch tiles must be a multiple of 128 lanes")
    grid = (B // batch_tile,)

    x_itemsize = jnp.dtype(x_t.dtype).itemsize
    w_itemsize = jnp.dtype(w1.dtype).itemsize
    o_itemsize = jnp.dtype(out_dtype).itemsize

    # Advisory cost estimate so XLA schedules/overlaps this (overhead-dominated
    # at small B) custom call sensibly against neighboring ops.
    flops = 2 * B * (d_in * H + H * H + H * d_out)
    transcendentals = 2 * B * H
    bytes_accessed = (
        d_in * B * x_itemsize
        + (w1.size + w2.size + w3.size) * w_itemsize
        + (b1.size + b2.size) * 4
        + d_out * B * o_itemsize
    )

    # VMEM budget: all blocks are double-buffered by the pipeline. Raise the
    # scoped limit only if needed, and never past v7x's 64 MiB per-TC VMEM.
    per_step_bytes = 2 * (
        d_in * batch_tile * x_itemsize
        + d_out * batch_tile * o_itemsize
        + (w1.size + w2.size + w3.size) * w_itemsize
        + (b1.size + b2.size) * 4
    ) + (1 << 20)  # headroom
    vmem_limit = None
    if per_step_bytes > (32 << 20):
        vmem_limit = min(per_step_bytes, 64 << 20)

    return pl.pallas_call(
        _mlp_kernel,
        out_shape=jax.ShapeDtypeStruct((d_out, B), out_dtype),
        grid_spec=pltpu.PrefetchScalarGridSpec(
            num_scalar_prefetch=0,
            grid=grid,
            in_specs=[
                pl.BlockSpec((d_in, batch_tile), lambda i: (0, i)),   # x^T tile
                pl.BlockSpec((H, d_in), lambda i: (0, 0)),            # W1
                pl.BlockSpec((H, 1), lambda i: (0, 0)),               # b1
                pl.BlockSpec((H, H), lambda i: (0, 0)),               # W2
                pl.BlockSpec((H, 1), lambda i: (0, 0)),               # b2
                pl.BlockSpec((d_out, H), lambda i: (0, 0)),           # W3
            ],
            out_specs=pl.BlockSpec((d_out, batch_tile), lambda i: (0, i)),
        ),
        compiler_params=pltpu.CompilerParams(
            dimension_semantics=("parallel",),
            vmem_limit_bytes=vmem_limit,
        ),
        cost_estimate=pl.CostEstimate(
            flops=flops,
            transcendentals=transcendentals,
            bytes_accessed=bytes_accessed,
        ),
    )(x_t, w1, b1, w2, b2, w3)


def mlp_forward(y, w1, b1, w2, b2, w3, *, batch_tile=None, compute_dtype=None):
    """PyTorch-equivalent MLP forward.

    y  : (B, d_in)
    w1 : (H, d_in), b1 : (H,)
    w2 : (H, H),    b2 : (H,)
    w3 : (d_out, H)          (no bias, matching linear3)
    Returns (B, d_out).

    The transposes here are cheap wrapper-side layout plumbing so the kernel
    sees a lane-dense (batch-on-lanes) slab.
    """
    out_t = mlp_forward_lane_major(
        y.T, w1, b1, w2, b2, w3,
        batch_tile=batch_tile, compute_dtype=compute_dtype)
    return out_t.T


def orthogonal_init(key, rows, cols, dtype=jnp.float32):
    """Deterministic orthogonal init, analogous to torch.nn.init.orthogonal_.

    Returns a (rows, cols) matrix in PyTorch Linear (out_features, in_features)
    layout.
    """
    flat = jax.random.normal(key, (max(rows, cols), min(rows, cols)),
                             dtype=jnp.float32)
    q, r = jnp.linalg.qr(flat)
    q = q * jnp.sign(jnp.diag(r))[None, :]   # sign fix (like torch)
    if rows < cols:
        q = q.T
    return q[:rows, :cols].astype(dtype)


if __name__ == "__main__":
    # Pendulum LNN setting: tiny feature dims, modest hidden width. Use a
    # batch large enough (256) to exercise lane-dense tiling + >=2 grid steps.
    input_dim, hidden_dim, output_dim = 2, 32, 1
    batch = 256

    key = jax.random.PRNGKey(0)
    k_x, k1, k2, k3 = jax.random.split(key, 4)

    # Weights in PyTorch (out_features, in_features) layout.
    W1 = orthogonal_init(k1, hidden_dim, input_dim)     # (32, 2)
    W2 = orthogonal_init(k2, hidden_dim, hidden_dim)    # (32, 32)
    W3 = orthogonal_init(k3, output_dim, hidden_dim)    # (1, 32)
    b1 = jnp.zeros((hidden_dim,), jnp.float32)
    b2 = jnp.zeros((hidden_dim,), jnp.float32)

    y = jax.random.normal(k_x, (batch, input_dim), jnp.float32)

    # Plain-JAX reference (same math as the PyTorch module).
    ref = jnp.tanh(y @ W1.T + b1)
    ref = jnp.tanh(ref @ W2.T + b2)
    ref = ref @ W3.T

    # 1) Full-precision path (safe on v5e/v6e/v7x), tiled batch: grid=(2,).
    out = mlp_forward(y, W1, b1, W2, b2, W3)
    out = jax.block_until_ready(out)
    assert out.shape == (batch, output_dim)
    assert jnp.allclose(out, ref, atol=1e-5, rtol=1e-5)

    # 2) bf16 matmul-operand path (v6e/v7x MXU fast path; f32 accum + f32 tanh).
    out_bf16 = mlp_forward(y, W1, b1, W2, b2, W3, compute_dtype=jnp.bfloat16)
    out_bf16 = jax.block_until_ready(out_bf16)
    assert out_bf16.shape == (batch, output_dim)
    assert jnp.allclose(out_bf16, ref, atol=1e-1, rtol=1e-1)

    # 3) Tiny production-like batch (B=8): falls back to a single grid step.
    y_small = y[:8]
    out_small = jax.block_until_ready(
        mlp_forward(y_small, W1, b1, W2, b2, W3))
    assert jnp.allclose(out_small, ref[:8], atol=1e-5, rtol=1e-5)

    print("KERNEL_OK")
</pallas_src>

<mosaic_0001>
module attributes {stable_mosaic.version = 11 : i64} {
  func.func @_mlp_kernel(%arg0: i32, %arg1: memref<2x128xf32, #tpu.memory_space<vmem>>, %arg2: memref<32x2xf32, #tpu.memory_space<vmem>>, %arg3: memref<32x1xf32, #tpu.memory_space<vmem>>, %arg4: memref<32x32xf32, #tpu.memory_space<vmem>>, %arg5: memref<32x1xf32, #tpu.memory_space<vmem>>, %arg6: memref<1x32xf32, #tpu.memory_space<vmem>>, %arg7: memref<1x128xf32, #tpu.memory_space<vmem>>) attributes {dimension_semantics = [#tpu.dimension_semantics<parallel>], iteration_bounds = array<i64: 2>, scalar_prefetch = 0 : i64, scratch_operands = 0 : i64, tpu.core_type = #tpu.core_type<tc>, window_params = [{transform_indices = @transform_0, window_bounds = array<i64: 2, 128>}, {pipeline_mode = #tpu.pipeline_mode<synchronous>, transform_indices = @transform_1, window_bounds = array<i64: 32, 2>}, {pipeline_mode = #tpu.pipeline_mode<synchronous>, transform_indices = @transform_2, window_bounds = array<i64: 32, 1>}, {pipeline_mode = #tpu.pipeline_mode<synchronous>, transform_indices = @transform_3, window_bounds = array<i64: 32, 32>}, {pipeline_mode = #tpu.pipeline_mode<synchronous>, transform_indices = @transform_4, window_bounds = array<i64: 32, 1>}, {pipeline_mode = #tpu.pipeline_mode<synchronous>, transform_indices = @transform_5, window_bounds = array<i64: 1, 32>}, {transform_indices = @transform_6, window_bounds = array<i64: 1, 128>}]} {
    %c0 = arith.constant 0 : index
    %c0_0 = arith.constant 0 : index
    %0 = vector.load %arg1[%c0, %c0_0] : memref<2x128xf32, #tpu.memory_space<vmem>>, vector<2x128xf32>
    %c0_1 = arith.constant 0 : index
    %c0_2 = arith.constant 0 : index
    %1 = vector.load %arg2[%c0_1, %c0_2] : memref<32x2xf32, #tpu.memory_space<vmem>>, vector<32x2xf32>
    %cst = arith.constant dense<0.000000e+00> : vector<32x128xf32>
    %2 = tpu.matmul %1, %0, %cst {dimension_numbers = #tpu.dot_dimension_numbers<[1], [0], [0], [1], [0, 0, 1, 1], [], []>} : vector<32x2xf32>, vector<2x128xf32>, vector<32x128xf32> -> vector<32x128xf32>
    %c0_3 = arith.constant 0 : index
    %c0_4 = arith.constant 0 : index
    %3 = vector.load %arg3[%c0_3, %c0_4] : memref<32x1xf32, #tpu.memory_space<vmem>>, vector<32x1xf32>
    %4 = vector.broadcast %3 : vector<32x1xf32> to vector<32x128xf32>
    %5 = arith.addf %2, %4 : vector<32x128xf32>
    %6 = math.tanh %5 : vector<32x128xf32>
    %c0_5 = arith.constant 0 : index
    %c0_6 = arith.constant 0 : index
    %7 = vector.load %arg4[%c0_5, %c0_6] : memref<32x32xf32, #tpu.memory_space<vmem>>, vector<32x32xf32>
    %cst_7 = arith.constant dense<0.000000e+00> : vector<32x128xf32>
    %8 = tpu.matmul %7, %6, %cst_7 {dimension_numbers = #tpu.dot_dimension_numbers<[1], [0], [0], [1], [0, 0, 1, 1], [], []>} : vector<32x32xf32>, vector<32x128xf32>, vector<32x128xf32> -> vector<32x128xf32>
    %c0_8 = arith.constant 0 : index
    %c0_9 = arith.constant 0 : index
    %9 = vector.load %arg5[%c0_8, %c0_9] : memref<32x1xf32, #tpu.memory_space<vmem>>, vector<32x1xf32>
    %10 = vector.broadcast %9 : vector<32x1xf32> to vector<32x128xf32>
    %11 = arith.addf %8, %10 : vector<32x128xf32>
    %12 = math.tanh %11 : vector<32x128xf32>
    %c0_10 = arith.constant 0 : index
    %c0_11 = arith.constant 0 : index
    %13 = vector.load %arg6[%c0_10, %c0_11] : memref<1x32xf32, #tpu.memory_space<vmem>>, vector<1x32xf32>
    %cst_12 = arith.constant dense<0.000000e+00> : vector<1x128xf32>
    %14 = tpu.matmul %13, %12, %cst_12 {dimension_numbers = #tpu.dot_dimension_numbers<[1], [0], [0], [1], [0, 0, 1, 1], [], []>} : vector<1x32xf32>, vector<32x128xf32>, vector<1x128xf32> -> vector<1x128xf32>
    %c0_13 = arith.constant 0 : index
    %c0_14 = arith.constant 0 : index
    %15 = vector.load %arg7[%c0_13, %c0_14] : memref<1x128xf32, #tpu.memory_space<vmem>>, vector<1x128xf32>
    tpu.vector_store %arg7[%c0_13, %c0_14], %14 {strides = array<i32>} : memref<1x128xf32, #tpu.memory_space<vmem>>, vector<1x128xf32>,
    return
  }
  func.func @transform_0(%arg0: i32) -> (i32, i32) {
    %c0_i32 = arith.constant 0 : i32
    %c0_i32_0 = arith.constant 0 : i32
    return %c0_i32, %arg0 : i32, i32
  }
  func.func @transform_1(%arg0: i32) -> (i32, i32) {
    %c0_i32 = arith.constant 0 : i32
    %c0_i32_0 = arith.constant 0 : i32
    %c0_i32_1 = arith.constant 0 : i32
    return %c0_i32, %c0_i32_0 : i32, i32
  }
  func.func @transform_2(%arg0: i32) -> (i32, i32) {
    %c0_i32 = arith.constant 0 : i32
    %c0_i32_0 = arith.constant 0 : i32
    %c0_i32_1 = arith.constant 0 : i32
    return %c0_i32, %c0_i32_0 : i32, i32
  }
  func.func @transform_3(%arg0: i32) -> (i32, i32) {
    %c0_i32 = arith.constant 0 : i32
    %c0_i32_0 = arith.constant 0 : i32
    %c0_i32_1 = arith.constant 0 : i32
    return %c0_i32, %c0_i32_0 : i32, i32
  }
  func.func @transform_4(%arg0: i32) -> (i32, i32) {
    %c0_i32 = arith.constant 0 : i32
    %c0_i32_0 = arith.constant 0 : i32
    %c0_i32_1 = arith.constant 0 : i32
    return %c0_i32, %c0_i32_0 : i32, i32
  }
  func.func @transform_5(%arg0: i32) -> (i32, i32) {
    %c0_i32 = arith.constant 0 : i32
    %c0_i32_0 = arith.constant 0 : i32
    %c0_i32_1 = arith.constant 0 : i32
    return %c0_i32, %c0_i32_0 : i32, i32
  }
  func.func @transform_6(%arg0: i32) -> (i32, i32) {
    %c0_i32 = arith.constant 0 : i32
    %c0_i32_0 = arith.constant 0 : i32
    return %c0_i32, %arg0 : i32, i32
  }
}

</mosaic_0001>

<bundles_post_ra>
// kernel: tpu_custom_call.1
= control target key start
LH: loop header
LB: loop body
LE: loop exit
PB: predicated region body
PF: predicated region fallthrough
CT: control target
= control target key end

     0   :  { %11 = vsyncpa [#allocation3], 0  ;;  %s1043_s0 = inlined_call_operand.vmem [shape: f32[2,256], index: 0, kind: input, shape index: {}]   ;;  %s1044_s1 = inlined_call_operand.vmem [shape: f32[32,2], index: 1, kind: input, shape index: {}]   ;;  %s1045_s2 = inlined_call_operand.vmem [shape: f32[32,1], index: 2, kind: input, shape index: {}]   ;;  %s1046_s3 = inlined_call_operand.vmem [shape: f32[32,32], index: 3, kind: input, shape index: {}]   ;;  %s1047_s4 = inlined_call_operand.vmem [shape: f32[32,1], index: 4, kind: input, shape index: {}]   ;;  %s1048_s5 = inlined_call_operand.vmem [shape: f32[1,32], index: 5, kind: input, shape index: {}]   ;;  %s1049_s6 = inlined_call_operand.hbm [shape: f32[1,256], index: 6, kind: output, shape index: {}]  }
   0x1   :  { %13 = vsyncpa [#allocation3 + $0x1], 0  ;;  %s884_s21 = smov 0   ;;  %s886_s22 = smov 0  }
   0x2   :  { %s888_s23 = smov 0   ;;  %s890_s24 = smov 0  }
   0x3 LB: > { %s905_s25 = sadd.s32 4294967295, %s843_s24   ;;  %s654_s26 = sadd.s32 4294967294, %s843_s24   ;;  %s843_s24 = sphi %s890_s24, %s1055_s24   ;;  %s839_s23 = sphi %s888_s23, %s1054_s23   ;;  %s835_s22 = sphi %s886_s22, %s1053_s22   ;;  %s831_s21 = sphi %s884_s21, %s1052_s21  }
   0x4   : > { %s909_s27 = sadd.s32 1, %s843_s24   ;;  %s157_s28 = sadd.s32 1, %s839_s23 }
   0x5   : > { %s154_s29 = ssub.s32 %s843_s24, %s909_s27  ;;  %p167_p0 = scmp.ne.s32.totalorder %s839_s23, %s835_s22 }
   0x6   : > { %p155_p1 = scmp.eq.s32.totalorder %s154_s29, 0  ;;  %p168_p2 = scmp.eq.s32.totalorder %s905_s25, 1 }
   0x7   : > { %p173_p3 = scmp.ne.s32.totalorder %s835_s22, %s831_s21  ;;  %p174_p4 = scmp.eq.s32.totalorder %s654_s26, 1 }
   0x8   : > { %s920_s30 = scalar_select %p155_p1, %s839_s23, %s157_s28  }
   0x9   : > { %p922_p5 = por %p168_p2, %p167_p0  ;;  %p926_p6 = por %p174_p4, %p173_p3 }
   0xa   : > { %p657_p7 = scmp.ge.s32.totalorder %s843_s24, 1  ;;  %p214_p8 = scmp.lt.s32.totalorder %s843_s24, 3 }
   0xc   : > { %p215_p9 = pnand %p657_p7, %p214_p8 }
   0xd   : > { %p242_p10 = scmp.lt.s32.totalorder (!%p215_p9), %s905_s25, 1  ;;  %s240_s18 = sand.u32 (!%p215_p9), 1, %s835_s22  }
   0xe   : > { %218 = sbr.rel (%p215_p9) target bundleno = 674 (0x2a2), region = 44  ;;  %s241_s19 = scalar_lea.vmem (!%p215_p9), [#allocation2], %s240_s18 }
   0xf   : > { %s599_s20 = sshll.u32 (!%p215_p9), %s241_s19, 4  ;;  %s587_s10 = scalar_lea.sflag (!%p215_p9), [#allocation3], %s240_s18  ;;  %s999_s20 = int_to_ptr.vmem [resolvable:$true] %s599_s20 }
  0x10   : > { %s783_s11 = scalar_lea.vmem (!%p215_p9), %s999_s20, 16 }
  0x11   : > { %p784_p11 = scmp.ne.s32.totalorder (!%p215_p9), %s999_s20, %s783_s11 }
  0x13   : > { %v247_v0 = vld [vmem:[%s1044_s1] sm:$0xff]  ;;  %vm275_vm0 = vcmask 15360   ;;  %v254_v1 = vld [vmem:[%s1045_s2 + $0x18] sm:$0xff]  ;;  %s243_s13 = scalar_select %p242_p10, %s905_s25, 1  ;;  %v845_v2 = vmov 0   ;;  %v252_v3 = vld [vmem:[%s1045_s2 + $0x8] sm:$0xff] }
  0x14   : > { %692 = vmatprep.mubr.msk.f32.mxu0 %vm275_vm0, %v247_v0  ;;  %765 = vset.pattern.permute.xlu0 %v845_v2  ;;  %vm288_vm1 = vcmask 1041408   ;;  %v253_v4 = vld [vmem:[%s1045_s2 + $0x10] sm:$0xff]  ;;  %v251_v5 = vld [vmem:[%s1045_s2] sm:$0xff]  ;;  %v248_v7 = vld [vmem:[%s1044_s1 + $0x8] sm:$0xff]  ;;  %vm409_vm2 = vcmask 261120   ;;  %v846_v34 = vmov 0.0   ;;  %p785_p12 = pnand %p784_p11, %p922_p5 }
  0x15   : > { %766 = vset.pattern.permute.xlu1 %v845_v2  ;;  %272 = vperm.xlu0 %765, %v254_v1   ;;  %s658_s16 = sshll.u32 %s243_s13, 1  ;;  %v249_v8 = vld [vmem:[%s1044_s1 + $0x10] sm:$0xff]  ;;  %v388_v9 = vld [vmem:[%s1047_s4 + $0x18] sm:$0xff]  ;;  %v386_v12 = vld [vmem:[%s1047_s4 + $0x8] sm:$0xff]  ;;  %vm847_vm3 = vmmov 0  }
  0x16   : > { %262 = vperm.xlu1 %766, %v252_v3   ;;  %s245_s26 = scalar_lea.vmem %s1043_s0, %s658_s16  ;;  %v387_v10 = vld [vmem:[%s1047_s4 + $0x10] sm:$0xff]  ;;  %v250_v11 = vld [vmem:[%s1044_s1 + $0x18] sm:$0xff]  ;;  %v385_v13 = vld [vmem:[%s1047_s4] sm:$0xff]  ;;  %p786_p13 = pneg %p785_p12 }
  0x17   : > { %v246_v6 = vld [vmem:[%s245_s26] sm:$0x3]  ;;  %v382_v31 = vld [vmem:[%s1046_s3 + $0x8] sm:$0xff]  ;;  %v383_v32 = vld [vmem:[%s1046_s3 + $0x10] sm:$0xff]  ;;  %s669_s26 = sshll.u32 %s905_s25, 4  ;;  %s848_s25 = smov [#allocation2]  }
  0x18   : > { %690 = vmatprep.subr.msk.mxu0 %vm288_vm1, %v246_v6  ;;  %v381_v14 = vld [vmem:[%s1046_s3] sm:$0xff]  ;;  %v384_v33 = vld [vmem:[%s1046_s3 + $0x18] sm:$0xff]  ;;  %s1004_s9 = scalar_lea.hbm %s1049_s6, %s669_s26  ;;  %s787_s12 = sshll.u32 %s848_s25, 4  ;;  %s788_s12 = int_to_ptr.vmem [resolvable:$false] %s787_s12 }
  0x19   : > { %267 = vperm.xlu0 %765, %v253_v4   ;;  %691 = vmatpush3.msk.msra.mxu0 %vm288_vm1, %v246_v6  ;;  %v511_v50 = vld [vmem:[%s1048_s5] sm:$0x1]  ;;  %s789_s13 = scalar_lea.vmem %s788_s12, 32  ;;  %p790_p0 = scmp.lt.s32.totalorder %s999_s20, %s788_s12 }
  0x1a   : > { %257 = vperm.xlu1 %766, %v251_v5   ;;  %693 = vmatmul.mubr.msk.f32.vlgmr.msra.gmra.mxu0 %vm275_vm0, %v248_v7  ;;  %p791_p1 = scmp.lt.s32.totalorder %s789_s13, %s783_s11 }
  0x1b   : > { %695 = vmatprep.mubr.msk.f32.mxu0 %vm275_vm0, %v249_v8  ;;  %706 = vmatprep.mubr.msk.f32.mxu1 %vm409_vm2, %v381_v14 }
  0x1c   : > { %712 = vmatprep.subr.mxu0 %v846_v34  ;;  %p792_p2 = por %p791_p1, %p790_p0 }
  0x1d   : > { %406 = vperm.xlu0 %765, %v388_v9  }
  0x1e   : > { %401 = vperm.xlu1 %766, %v387_v10   ;;  %696 = vmatmul.mubr.msk.f32.gmra.mxu0 %vm275_vm0, %v250_v11  ;;  %p793_p3 = pnand %p792_p2, %p786_p13 }
  0x1f   : > { %720 = vmatprep.mubr.msk.f32.mxu0 %vm847_vm3, %v846_v34 }
  0x21   : > { %396 = vperm.xlu0 %765, %v386_v12  }
  0x22   : > { %391 = vperm.xlu1 %766, %v385_v13  }
  0x90   : > { %v273_v15 = vpop.permute.xlu0 %272 }
  0x91   : > { %v263_v17 = vpop.permute.xlu1 %262 }
  0x94   : > { %v268_v21 = vpop.permute.xlu0 %267 }
  0x95   : > { %v258_v25 = vpop.permute.xlu1 %257 }
  0x98   : > { %v407_v35 = vpop.permute.xlu0 %406 }
  0x99   : > { %v402_v37 = vpop.permute.xlu1 %401 }
  0x9c   : > { %v397_v41 = vpop.permute.xlu0 %396 }
  0x9d   : > { %v392_v45 = vpop.permute.xlu1 %391 }
  0xda   : > { %v694_v16 = vpop.f32.mrf.mxu0 }
  0xdb   : > { %v364_v23 = vadd.f32 %v694_v16, %v263_v17 }
  0xdc   : > { %v358_v18 = vpop.f32.mrf.mxu0 }
  0xdd   : > { %v359_v26 = vadd.f32 %v358_v18, %v258_v25 }
  0xde   : > { %v697_v19 = vpop.f32.mrf.mxu0 }
  0xdf   : > { %v374_v20 = vadd.f32 %v697_v19, %v273_v15 }
  0xe0   : > { %v368_v22 = vpop.f32.mrf.mxu0 }
  0xe1   : > { %767 = vtanh.f32 %v374_v20  ;;  %v369_v24 = vadd.f32 %v368_v22, %v268_v21 }
  0xe3   : > { %769 = vtanh.f32 %v369_v24 }
  0xe4   : > { %771 = vtanh.f32 %v364_v23 }
  0xe5   : > { %773 = vtanh.f32 %v359_v26 }
  0xee   : > { %v768_v27 = vpop.eup %767 }
  0xef   : > { %698 = vmatprep.subr.mxu1 %v768_v27 }
  0xf0   : > { %v770_v28 = vpop.eup %769  ;;  %699 = vmatpush3.msra.mxu1 %v768_v27 }
  0xf1   : > { %700 = vmatprep.subr.mxu1 %v770_v28  ;;  %v772_v29 = vpop.eup %771 }
  0xf2   : > { %701 = vmatpush3.msra.mxu1 %v770_v28  ;;  %v774_v30 = vpop.eup %773 }
  0xf3   : > { %702 = vmatprep.subr.mxu1 %v772_v29 }
  0xf4   : > { %703 = vmatpush3.msra.mxu1 %v772_v29 }
  0xf5   : > { %704 = vmatprep.subr.mxu1 %v774_v30 }
  0xf6   : > { %705 = vmatpush3.msra.mxu1 %v774_v30 }
  0xf7   : > { %707 = vmatmul.mubr.msk.f32.vlgmr.msra.gmra.mxu1 %vm409_vm2, %v382_v31 }
  0xf8   : > { %709 = vmatprep.mubr.msk.f32.mxu1 %vm409_vm2, %v383_v32 }
  0xfb   : > { %710 = vmatmul.mubr.msk.f32.gmra.mxu1 %vm409_vm2, %v384_v33 }
 0x1b7   : > { %v708_v36 = vpop.f32.mrf.mxu1 }
 0x1b8   : > { %v494_v43 = vadd.f32 %v708_v36, %v397_v41 }
 0x1b9   : > { %v488_v38 = vpop.f32.mrf.mxu1 }
 0x1ba   : > { %v489_v46 = vadd.f32 %v488_v38, %v392_v45 }
 0x1bb   : > { %v711_v39 = vpop.f32.mrf.mxu1 }
 0x1bc   : > { %v504_v40 = vadd.f32 %v711_v39, %v407_v35 }
 0x1bd   : > { %v498_v42 = vpop.f32.mrf.mxu1 }
 0x1be   : > { %775 = vtanh.f32 %v504_v40  ;;  %v499_v44 = vadd.f32 %v498_v42, %v402_v37 }
 0x1c0   : > { %777 = vtanh.f32 %v499_v44 }
 0x1c1   : > { %779 = vtanh.f32 %v494_v43 }
 0x1c2   : > { %781 = vtanh.f32 %v489_v46 }
 0x1cb   : > { %v776_v47 = vpop.eup %775 }
 0x1cc   : > { %713 = vmatpush3.msra.mxu0 %v776_v47 }
 0x1cd   : > { %v778_v48 = vpop.eup %777  ;;  %714 = vmatprep.subr.mxu0 %v846_v34 }
 0x1ce   : > { %715 = vmatpush3.msra.mxu0 %v778_v48  ;;  %v780_v49 = vpop.eup %779 }
 0x1cf   : > { %716 = vmatprep.subr.mxu0 %v846_v34  ;;  %v782_v51 = vpop.eup %781 }
 0x1d0   : > { %717 = vmatpush3.msra.mxu0 %v780_v49 }
 0x1d1   : > { %718 = vmatprep.subr.mxu0 %v846_v34 }
 0x1d2   : > { %719 = vmatpush3.msra.mxu0 %v782_v51 }
 0x1d3   : > { %721 = vmatmul.mubr.msk.f32.vlgmr.msra.gmra.mxu0 %vm409_vm2, %v511_v50 }
 0x293   : > { %v581_v52 = vpop.f32.mrf.mxu0 }
 0x294   : > { %585 = vst [vmem:[%s241_s19] sm:$0x1] %v581_v52 }
 0x295   : > { %v722_v53 = vpop.f32.mrf.mxu0 }
 0x296   : > { %796 = shalt.err (!%p793_p3)
}
 0x297   : > { %s797_s14 = scalar_lea.hbm %s1004_s9, 16  ;;  %s801_s17 = scalar_lea.hbm %s1049_s6, 32 }
 0x298   : > { %p798_p4 = scmp.ne.s32.totalorder %s1004_s9, %s797_s14  ;;  %p802_p9 = scmp.lt.s32.totalorder %s1004_s9, %s1049_s6 }
 0x299   : > { %p803_p10 = scmp.lt.s32.totalorder %s801_s17, %s797_s14 }
 0x29a   : > { %p799_p7 = pnand %p798_p4, %p922_p5 }
 0x29b   : > { %p804_p11 = por %p803_p10, %p802_p9 }
 0x29c   : > { %p800_p8 = pneg %p799_p7 }
 0x29e   : > { %p805_p12 = pnand %p804_p11, %p800_p8 }
 0x2a0   : > { %808 = shalt.err (!%p805_p12)
}
 0x2a1   : > { %723 = dma.vmem_to_hbm [thread:$0]  (%p922_p5), %s999_s20, 16, %s1004_s9, %s587_s10  }
 0x2a2 PF: > { %p729_p13 = scmp.ge.s32.totalorder %s843_s24, 2  ;;  %s611_s26 = sand.u32 1, %s831_s21  }
 0x2a3   : > { %s612_s28 = scalar_lea.sflag [#allocation3], %s611_s26 }
 0x2a4   : > { %p726_p0 = pnand %p729_p13, %p926_p6 }
 0x2a6   : > { %p727_p1 = pneg %p726_p0 }
 0x2a8   : > { %826 = dma.done.wait (%p727_p1), %s612_s28, 16  }
 0x2a9   : > { %828 = vsyncadd (%p727_p1), %s612_s28, 4294967280  ;;  %p16_p2 = scmp.ge.s32.totalorder %s909_s27, 4   ;;  %s1052_s21 = smov %s835_s22 }
 0x2aa   : > { %s1053_s22 = smov %s839_s23  ;;  %s1054_s23 = smov %s920_s30 }
 0x2ab   : > { %s1055_s24 = smov %s909_s27  ;;  %18 = sbr.rel (!%p16_p2) target bundleno = 3 (0x3), region = 79 }
 0x2b0   :  { %616 = vsyncpa [#allocation3], 1 }
 0x2b1   :  { %618 = vsyncpa [#allocation3 + $0x1], 1 }

</bundles_post_ra>
